<compile_context>
chip_gen: v7x
topology: tpu7x:2x2x1
jax: 0.10.0
libtpu: 0.0.40
codegen_flags: <defaults>
</compile_context>

<pallas_src>
import jax
import jax.numpy as jnp
from jax.experimental import pallas as pl
from jax.experimental.pallas import tpu as pltpu

_SUBLANE = 8


def _round_up(n, m):
    return (n + m - 1) // m * m


def _leaky_relu(x, slope=0.01):
    # PyTorch nn.LeakyReLU default negative_slope = 0.01; f32 on the VPU.
    return jnp.where(x > 0, x, slope * x)


def _student_kernel(enc_ref, obs_ref, w1e_ref, w1o_ref, b1_ref,
                    w2_ref, b2_ref, w3_ref, b3_ref, o_ref):
    # enc/obs tiles: [TB, enc_dim] / [TB, obs_dim]; weights resident in VMEM.
    cdt = w1e_ref.dtype
    enc = enc_ref[...].astype(cdt)
    obs = obs_ref[...].astype(cdt)

    # Fused concat: cat((enc, obs), 1) @ w1  ==  enc @ w1[:enc_dim] + obs @ w1[enc_dim:]
    h1 = (jnp.dot(enc, w1e_ref[...], preferred_element_type=jnp.float32)
          + jnp.dot(obs, w1o_ref[...], preferred_element_type=jnp.float32)
          + b1_ref[...])
    h1 = _leaky_relu(h1)

    h2 = jnp.dot(h1.astype(cdt), w2_ref[...],
                 preferred_element_type=jnp.float32) + b2_ref[...]
    h2 = _leaky_relu(h2)

    h3 = jnp.dot(h2.astype(cdt), w3_ref[...],
                 preferred_element_type=jnp.float32) + b3_ref[...]
    o_ref[...] = h3.astype(o_ref.dtype)


def init_params(key, in_dim, hidden_dim, out_dim):
    """Deterministic synthetic classifier parameters (small normal), true sizes."""
    k1, k2, k3, k4, k5, k6 = jax.random.split(key, 6)
    s = 0.1
    return {
        "w1": s * jax.random.normal(k1, (in_dim, hidden_dim), jnp.float32),
        "b1": s * jax.random.normal(k2, (1, hidden_dim), jnp.float32),
        "w2": s * jax.random.normal(k3, (hidden_dim, hidden_dim), jnp.float32),
        "b2": s * jax.random.normal(k4, (1, hidden_dim), jnp.float32),
        "w3": s * jax.random.normal(k5, (hidden_dim, out_dim), jnp.float32),
        "b3": s * jax.random.normal(k6, (1, out_dim), jnp.float32),
    }


def prepare_params(params, encoder_output_dim, compute_dtype=jnp.bfloat16):
    """Split w1 into encoder-rows / obs-rows halves; weights in compute dtype,
    biases kept in f32 (f32 accumulation + bias add in-kernel). No lane padding."""
    w1 = params["w1"]
    return {
        "w1e": w1[:encoder_output_dim, :].astype(compute_dtype),
        "w1o": w1[encoder_output_dim:, :].astype(compute_dtype),
        "b1": params["b1"].reshape(1, -1).astype(jnp.float32),
        "w2": params["w2"].astype(compute_dtype),
        "b2": params["b2"].reshape(1, -1).astype(jnp.float32),
        "w3": params["w3"].astype(compute_dtype),
        "b3": params["b3"].reshape(1, -1).astype(jnp.float32),
    }


def _pick_tb(batch, tb_max):
    """Batch tile: multiple of 8 sublanes, >=2 grid steps when the batch allows it
    (v7x megacore), capped so big batches still get large tiles."""
    bp8 = _round_up(max(batch, 1), _SUBLANE)
    tb = min(tb_max, max(_SUBLANE, bp8 // 2))
    return max(_SUBLANE, (tb // _SUBLANE) * _SUBLANE)


def student_forward(obs, encoder_out, prepared, *, tb=None, tb_max=2048):
    """Student.forward(obs, history) with the encoder output precomputed.

    Matches: x = encoder(history); x = cat((x, obs), 1); return classifier(x)
    obs: [B, obs_dim] f32, encoder_out: [B, enc_dim] f32.  Returns [B, out_dim] f32.
    """
    # TODO(synk): the student_encoder (a TCN) is injected at construction time and its
    # architecture is not defined in this module's spec; `encoder_out` stands in for
    # self.encoder(history). The fused concat + classifier below matches Student.forward.
    B, obs_dim = obs.shape
    _, enc_dim = encoder_out.shape
    hid = prepared["w2"].shape[0]
    out_dim = prepared["w3"].shape[1]

    if tb is None:
        tb = _pick_tb(B, tb_max)
    tb = max(_SUBLANE, (tb // _SUBLANE) * _SUBLANE)
    Bp = _round_up(B, tb)

    # Only the batch dim ever needs padding (zeros -> exact for matmul/bias/LeakyReLU).
    if Bp != B:
        encoder_out = jnp.zeros((Bp, enc_dim), encoder_out.dtype).at[:B].set(encoder_out)
        obs = jnp.zeros((Bp, obs_dim), obs.dtype).at[:B].set(obs)

    grid = (Bp // tb,)

    # Cost estimate from real (unpadded) dims — scheduling hint only.
    in_dim = enc_dim + obs_dim
    flops = 2 * B * (in_dim * hid + hid * hid + hid * out_dim)
    bytes_accessed = (
        B * (enc_dim + obs_dim) * obs.dtype.itemsize
        + sum(int(v.size) * v.dtype.itemsize for v in prepared.values())
        + B * out_dim * 4
    )

    resident = lambda i: (0, 0)  # weights/biases: constant block -> stay in VMEM

    out = pl.pallas_call(
        _student_kernel,
        out_shape=jax.ShapeDtypeStruct((Bp, out_dim), jnp.float32),
        grid=grid,
        in_specs=[
            pl.BlockSpec((tb, enc_dim), lambda i: (i, 0)),   # encoder output: batch-tiled
            pl.BlockSpec((tb, obs_dim), lambda i: (i, 0)),   # obs: batch-tiled
            pl.BlockSpec((enc_dim, hid), resident),          # w1 (encoder rows)
            pl.BlockSpec((obs_dim, hid), resident),          # w1 (obs rows)
            pl.BlockSpec((1, hid), resident),                # b1
            pl.BlockSpec((hid, hid), resident),              # w2
            pl.BlockSpec((1, hid), resident),                # b2
            pl.BlockSpec((hid, out_dim), resident),          # w3
            pl.BlockSpec((1, out_dim), resident),            # b3
        ],
        out_specs=pl.BlockSpec((tb, out_dim), lambda i: (i, 0)),  # narrow (true-width) output
        compiler_params=pltpu.CompilerParams(
            dimension_semantics=("parallel",),  # batch axis sharded across v7x TensorCores
        ),
        cost_estimate=pl.CostEstimate(
            flops=flops, transcendentals=0, bytes_accessed=bytes_accessed),
    )(encoder_out, obs,
      prepared["w1e"], prepared["w1o"], prepared["b1"],
      prepared["w2"], prepared["b2"], prepared["w3"], prepared["b3"])

    return out[:B] if Bp != B else out


def reference_forward(x, params):
    """Pure-JAX f32 reference (classifier on already-concatenated x)."""
    h1 = _leaky_relu(x @ params["w1"] + params["b1"])
    h2 = _leaky_relu(h1 @ params["w2"] + params["b2"])
    return h2 @ params["w3"] + params["b3"]


if __name__ == "__main__":
    key = jax.random.PRNGKey(0)
    k_p, k_obs, k_enc = jax.random.split(key, 3)

    encoder_output_dim = 16
    non_priv_obs_dim = 16
    hidden_dim = 32
    output_dim = 8
    batch = 256  # batch env steps together; tile heuristic gives grid=(2,) here

    in_dim = encoder_output_dim + non_priv_obs_dim
    params = init_params(k_p, in_dim, hidden_dim, output_dim)

    obs = jax.random.normal(k_obs, (batch, non_priv_obs_dim), jnp.float32)
    encoder_out = jax.random.normal(k_enc, (batch, encoder_output_dim), jnp.float32)

    ref = reference_forward(jnp.concatenate([encoder_out, obs], axis=1), params)

    # f32 compute path: should match the pure-JAX reference tightly.
    p_f32 = prepare_params(params, encoder_output_dim, jnp.float32)
    out_f32 = jax.block_until_ready(student_forward(obs, encoder_out, p_f32))
    assert out_f32.shape == (batch, output_dim)
    assert jnp.allclose(out_f32, ref, atol=1e-4, rtol=1e-4)

    # bf16 weight path (recommended on v5e/v6e/v7x): f32 accumulation, looser tolerance.
    p_bf16 = prepare_params(params, encoder_output_dim, jnp.bfloat16)
    out_bf16 = jax.block_until_ready(student_forward(obs, encoder_out, p_bf16))
    assert out_bf16.shape == (batch, output_dim)
    assert jnp.allclose(out_bf16, ref, atol=5e-2, rtol=5e-2)

    # Uneven batch (exercises the batch-pad + slice path).
    out_odd = jax.block_until_ready(
        student_forward(obs[:37], encoder_out[:37], p_f32))
    assert out_odd.shape == (37, output_dim)
    assert jnp.allclose(out_odd, ref[:37], atol=1e-4, rtol=1e-4)

    print("KERNEL_OK")
</pallas_src>

<mosaic_0001>
module attributes {stable_mosaic.version = 11 : i64} {
  func.func @_student_kernel(%arg0: i32, %arg1: memref<128x16xf32, #tpu.memory_space<vmem>>, %arg2: memref<128x16xf32, #tpu.memory_space<vmem>>, %arg3: memref<16x32xf32, #tpu.memory_space<vmem>>, %arg4: memref<16x32xf32, #tpu.memory_space<vmem>>, %arg5: memref<1x32xf32, #tpu.memory_space<vmem>>, %arg6: memref<32x32xf32, #tpu.memory_space<vmem>>, %arg7: memref<1x32xf32, #tpu.memory_space<vmem>>, %arg8: memref<32x8xf32, #tpu.memory_space<vmem>>, %arg9: memref<1x8xf32, #tpu.memory_space<vmem>>, %arg10: memref<128x8xf32, #tpu.memory_space<vmem>>) attributes {dimension_semantics = [#tpu.dimension_semantics<parallel>], iteration_bounds = array<i64: 2>, scalar_prefetch = 0 : i64, scratch_operands = 0 : i64, tpu.core_type = #tpu.core_type<tc>, window_params = [{transform_indices = @transform_0, window_bounds = array<i64: 128, 16>}, {transform_indices = @transform_1, window_bounds = array<i64: 128, 16>}, {pipeline_mode = #tpu.pipeline_mode<synchronous>, transform_indices = @transform_2, window_bounds = array<i64: 16, 32>}, {pipeline_mode = #tpu.pipeline_mode<synchronous>, transform_indices = @transform_3, window_bounds = array<i64: 16, 32>}, {pipeline_mode = #tpu.pipeline_mode<synchronous>, transform_indices = @transform_4, window_bounds = array<i64: 1, 32>}, {pipeline_mode = #tpu.pipeline_mode<synchronous>, transform_indices = @transform_5, window_bounds = array<i64: 32, 32>}, {pipeline_mode = #tpu.pipeline_mode<synchronous>, transform_indices = @transform_6, window_bounds = array<i64: 1, 32>}, {pipeline_mode = #tpu.pipeline_mode<synchronous>, transform_indices = @transform_7, window_bounds = array<i64: 32, 8>}, {pipeline_mode = #tpu.pipeline_mode<synchronous>, transform_indices = @transform_8, window_bounds = array<i64: 1, 8>}, {transform_indices = @transform_9, window_bounds = array<i64: 128, 8>}]} {
    %c0 = arith.constant 0 : index
    %c0_0 = arith.constant 0 : index
    %0 = vector.load %arg1[%c0, %c0_0] : memref<128x16xf32, #tpu.memory_space<vmem>>, vector<128x16xf32>
    %c0_1 = arith.constant 0 : index
    %c0_2 = arith.constant 0 : index
    %1 = vector.load %arg2[%c0_1, %c0_2] : memref<128x16xf32, #tpu.memory_space<vmem>>, vector<128x16xf32>
    %c0_3 = arith.constant 0 : index
    %c0_4 = arith.constant 0 : index
    %2 = vector.load %arg3[%c0_3, %c0_4] : memref<16x32xf32, #tpu.memory_space<vmem>>, vector<16x32xf32>
    %cst = arith.constant dense<0.000000e+00> : vector<128x32xf32>
    %3 = tpu.matmul %0, %2, %cst {dimension_numbers = #tpu.dot_dimension_numbers<[1], [0], [0], [1], [0, 0, 1, 1], [], []>} : vector<128x16xf32>, vector<16x32xf32>, vector<128x32xf32> -> vector<128x32xf32>
    %c0_5 = arith.constant 0 : index
    %c0_6 = arith.constant 0 : index
    %4 = vector.load %arg4[%c0_5, %c0_6] : memref<16x32xf32, #tpu.memory_space<vmem>>, vector<16x32xf32>
    %cst_7 = arith.constant dense<0.000000e+00> : vector<128x32xf32>
    %5 = tpu.matmul %1, %4, %cst_7 {dimension_numbers = #tpu.dot_dimension_numbers<[1], [0], [0], [1], [0, 0, 1, 1], [], []>} : vector<128x16xf32>, vector<16x32xf32>, vector<128x32xf32> -> vector<128x32xf32>
    %6 = arith.addf %3, %5 : vector<128x32xf32>
    %c0_8 = arith.constant 0 : index
    %c0_9 = arith.constant 0 : index
    %7 = vector.load %arg5[%c0_8, %c0_9] : memref<1x32xf32, #tpu.memory_space<vmem>>, vector<1x32xf32>
    %8 = vector.broadcast %7 : vector<1x32xf32> to vector<128x32xf32>
    %9 = arith.addf %6, %8 : vector<128x32xf32>
    %cst_10 = arith.constant 0.000000e+00 : f32
    %10 = vector.broadcast %cst_10 : f32 to vector<128x32xf32>
    %11 = arith.cmpf ogt, %9, %10 : vector<128x32xf32>
    %cst_11 = arith.constant 0.00999999977 : f32
    %12 = vector.broadcast %cst_11 : f32 to vector<128x32xf32>
    %13 = arith.mulf %12, %9 : vector<128x32xf32>
    %14 = arith.select %11, %9, %13 : vector<128x32xi1>, vector<128x32xf32>
    %c0_12 = arith.constant 0 : index
    %c0_13 = arith.constant 0 : index
    %15 = vector.load %arg6[%c0_12, %c0_13] : memref<32x32xf32, #tpu.memory_space<vmem>>, vector<32x32xf32>
    %cst_14 = arith.constant dense<0.000000e+00> : vector<128x32xf32>
    %16 = tpu.matmul %14, %15, %cst_14 {dimension_numbers = #tpu.dot_dimension_numbers<[1], [0], [0], [1], [0, 0, 1, 1], [], []>} : vector<128x32xf32>, vector<32x32xf32>, vector<128x32xf32> -> vector<128x32xf32>
    %c0_15 = arith.constant 0 : index
    %c0_16 = arith.constant 0 : index
    %17 = vector.load %arg7[%c0_15, %c0_16] : memref<1x32xf32, #tpu.memory_space<vmem>>, vector<1x32xf32>
    %18 = vector.broadcast %17 : vector<1x32xf32> to vector<128x32xf32>
    %19 = arith.addf %16, %18 : vector<128x32xf32>
    %cst_17 = arith.constant 0.000000e+00 : f32
    %20 = vector.broadcast %cst_17 : f32 to vector<128x32xf32>
    %21 = arith.cmpf ogt, %19, %20 : vector<128x32xf32>
    %cst_18 = arith.constant 0.00999999977 : f32
    %22 = vector.broadcast %cst_18 : f32 to vector<128x32xf32>
    %23 = arith.mulf %22, %19 : vector<128x32xf32>
    %24 = arith.select %21, %19, %23 : vector<128x32xi1>, vector<128x32xf32>
    %c0_19 = arith.constant 0 : index
    %c0_20 = arith.constant 0 : index
    %25 = vector.load %arg8[%c0_19, %c0_20] : memref<32x8xf32, #tpu.memory_space<vmem>>, vector<32x8xf32>
    %cst_21 = arith.constant dense<0.000000e+00> : vector<128x8xf32>
    %26 = tpu.matmul %24, %25, %cst_21 {dimension_numbers = #tpu.dot_dimension_numbers<[1], [0], [0], [1], [0, 0, 1, 1], [], []>} : vector<128x32xf32>, vector<32x8xf32>, vector<128x8xf32> -> vector<128x8xf32>
    %c0_22 = arith.constant 0 : index
    %c0_23 = arith.constant 0 : index
    %27 = vector.load %arg9[%c0_22, %c0_23] : memref<1x8xf32, #tpu.memory_space<vmem>>, vector<1x8xf32>
    %28 = vector.broadcast %27 : vector<1x8xf32> to vector<128x8xf32>
    %29 = arith.addf %26, %28 : vector<128x8xf32>
    %c0_24 = arith.constant 0 : index
    %c0_25 = arith.constant 0 : index
    %30 = vector.load %arg10[%c0_24, %c0_25] : memref<128x8xf32, #tpu.memory_space<vmem>>, vector<128x8xf32>
    tpu.vector_store %arg10[%c0_24, %c0_25], %29 {strides = array<i32>} : memref<128x8xf32, #tpu.memory_space<vmem>>, vector<128x8xf32>,
    return
  }
  func.func @transform_0(%arg0: i32) -> (i32, i32) {
    %c0_i32 = arith.constant 0 : i32
    %c0_i32_0 = arith.constant 0 : i32
    return %arg0, %c0_i32 : i32, i32
  }
  func.func @transform_1(%arg0: i32) -> (i32, i32) {
    %c0_i32 = arith.constant 0 : i32
    %c0_i32_0 = arith.constant 0 : i32
    return %arg0, %c0_i32 : i32, i32
  }
  func.func @transform_2(%arg0: i32) -> (i32, i32) {
    %c0_i32 = arith.constant 0 : i32
    %c0_i32_0 = arith.constant 0 : i32
    %c0_i32_1 = arith.constant 0 : i32
    return %c0_i32, %c0_i32_0 : i32, i32
  }
  func.func @transform_3(%arg0: i32) -> (i32, i32) {
    %c0_i32 = arith.constant 0 : i32
    %c0_i32_0 = arith.constant 0 : i32
    %c0_i32_1 = arith.constant 0 : i32
    return %c0_i32, %c0_i32_0 : i32, i32
  }
  func.func @transform_4(%arg0: i32) -> (i32, i32) {
    %c0_i32 = arith.constant 0 : i32
    %c0_i32_0 = arith.constant 0 : i32
    %c0_i32_1 = arith.constant 0 : i32
    return %c0_i32, %c0_i32_0 : i32, i32
  }
  func.func @transform_5(%arg0: i32) -> (i32, i32) {
    %c0_i32 = arith.constant 0 : i32
    %c0_i32_0 = arith.constant 0 : i32
    %c0_i32_1 = arith.constant 0 : i32
    return %c0_i32, %c0_i32_0 : i32, i32
  }
  func.func @transform_6(%arg0: i32) -> (i32, i32) {
    %c0_i32 = arith.constant 0 : i32
    %c0_i32_0 = arith.constant 0 : i32
    %c0_i32_1 = arith.constant 0 : i32
    return %c0_i32, %c0_i32_0 : i32, i32
  }
  func.func @transform_7(%arg0: i32) -> (i32, i32) {
    %c0_i32 = arith.constant 0 : i32
    %c0_i32_0 = arith.constant 0 : i32
    %c0_i32_1 = arith.constant 0 : i32
    return %c0_i32, %c0_i32_0 : i32, i32
  }
  func.func @transform_8(%arg0: i32) -> (i32, i32) {
    %c0_i32 = arith.constant 0 : i32
    %c0_i32_0 = arith.constant 0 : i32
    %c0_i32_1 = arith.constant 0 : i32
    return %c0_i32, %c0_i32_0 : i32, i32
  }
  func.func @transform_9(%arg0: i32) -> (i32, i32) {
    %c0_i32 = arith.constant 0 : i32
    %c0_i32_0 = arith.constant 0 : i32
    return %arg0, %c0_i32 : i32, i32
  }
}

</mosaic_0001>

<bundles_post_ra>
// kernel: tpu_custom_call.1
= control target key start
LH: loop header
LB: loop body
LE: loop exit
PB: predicated region body
PF: predicated region fallthrough
CT: control target
= control target key end

     0   :  { %s1776_s30 = smov 0   ;;  %s2016_s0 = inlined_call_operand.vmem [shape: f32[256,16], index: 0, kind: input, shape index: {}]   ;;  %s2017_s1 = inlined_call_operand.vmem [shape: f32[256,16], index: 1, kind: input, shape index: {}]   ;;  %s2018_s2 = inlined_call_operand.vmem [shape: f32[16,32], index: 2, kind: input, shape index: {}]   ;;  %s2019_s3 = inlined_call_operand.vmem [shape: f32[16,32], index: 3, kind: input, shape index: {}]   ;;  %s2020_s4 = inlined_call_operand.vmem [shape: f32[1,32], index: 4, kind: input, shape index: {}]   ;;  %s2021_s5 = inlined_call_operand.vmem [shape: f32[32,32], index: 5, kind: input, shape index: {}]   ;;  %s2022_s6 = inlined_call_operand.vmem [shape: f32[1,32], index: 6, kind: input, shape index: {}]   ;;  %s2023_s7 = inlined_call_operand.vmem [shape: f32[32,8], index: 7, kind: input, shape index: {}]   ;;  %s2024_s8 = inlined_call_operand.vmem [shape: f32[1,8], index: 8, kind: input, shape index: {}]   ;;  %s2025_s9 = inlined_call_operand.vmem [shape: f32[256,8], index: 9, kind: output, shape index: {}]  }
   0x1 LB: > { %s1394_s10 = sadd.s32 4294967295, %s1724_s30   ;;  %p1398_p0 = scmp.ge.s32.totalorder %s1724_s30, 1  ;;  %s1724_s30 = sphi %s1776_s30, %s19_s30  }
   0x2   : > { %p299_p1 = scmp.lt.s32.totalorder %s1724_s30, 3 }
   0x4   : > { %p300_p2 = pnand %p1398_p0, %p299_p1 }
   0x5   : > { %v392_v0 = vld [vmem:[%s2019_s3] sm:$0xff] (!%p300_p2)  ;;  %v393_v1 = vld [vmem:[%s2019_s3 + $0x8] sm:$0xff] (!%p300_p2)  ;;  %s1399_s15 = sshll.u32 (!%p300_p2), %s1394_s10, 4  ;;  %vm394_vm0 = vcmask (!%p300_p2), 130048   ;;  %v854_v41 = vld [vmem:[%s2021_s5 + $0x10] sm:$0xff] (!%p300_p2)  ;;  %vm863_vm3 = vcmask (!%p300_p2), 261120  }
   0x6   : > { %303 = sbr.rel (%p300_p2) target bundleno = 732 (0x2dc), region = 56  ;;  %v390_v2 = vld [vmem:[%s2018_s2] sm:$0xff] (!%p300_p2)  ;;  %v1670_v3 = vpack.c.bf16 (!%p300_p2), %v393_v1, %v392_v0  ;;  %p341_p3 = scmp.lt.s32.totalorder (!%p300_p2), %s1399_s15, 31  ;;  %v391_v4 = vld [vmem:[%s2018_s2 + $0x8] sm:$0xff] (!%p300_p2)  ;;  %v855_v42 = vld [vmem:[%s2021_s5 + $0x18] sm:$0xff] (!%p300_p2) }
   0x7   : > { %v1674_v5 = vpack.c.bf16 (!%p300_p2), %v391_v4, %v390_v2  ;;  %v852_v38 = vld [vmem:[%s2021_s5] sm:$0xff] (!%p300_p2)  ;;  %v853_v39 = vld [vmem:[%s2021_s5 + $0x8] sm:$0xff] (!%p300_p2)  ;;  %v1682_v43 = vpack.c.bf16 (!%p300_p2), %v855_v42, %v854_v41  ;;  %v1107_v53 = vld [vmem:[%s2023_s7 + $0x10] sm:$0xff] (!%p300_p2) }
   0x8   : > { %1671 = vmatprep.subr.bf16.mxu0 (!%p300_p2), %v1670_v3  ;;  %v1678_v40 = vpack.c.bf16 (!%p300_p2), %v853_v39, %v852_v38  ;;  %v1105_v44 = vld [vmem:[%s2023_s7] sm:$0xff] (!%p300_p2)  ;;  %v1106_v45 = vld [vmem:[%s2023_s7 + $0x8] sm:$0xff] (!%p300_p2)  ;;  %v1108_v54 = vld [vmem:[%s2023_s7 + $0x18] sm:$0xff] (!%p300_p2) }
   0x9   : > { %1673 = vmatpush3.bf16.msra.mxu0 (!%p300_p2), %v1670_v3  ;;  %v1686_v46 = vpack.c.bf16 (!%p300_p2), %v1106_v45, %v1105_v44  ;;  %v1895_v47 = vld [vmem:[%s2020_s4] ss:$0 sm:$0xff] (!%p300_p2)  ;;  %v1690_v61 = vpack.c.bf16 (!%p300_p2), %v1108_v54, %v1107_v53 }
   0xa   : > { %1675 = vmatprep.subr.bf16.mxu0 (!%p300_p2), %v1674_v5  ;;  %1679 = vmatprep.subr.bf16.mxu1 (!%p300_p2), %v1678_v40 }
   0xb   : > { %1681 = vmatpush3.bf16.msra.mxu1 (!%p300_p2), %v1678_v40 }
   0xc   : > { %1683 = vmatprep.subr.bf16.mxu1 (!%p300_p2), %v1682_v43 }
   0xd   : > { %s2027_s15 = smov (!%p341_p3, %s1399_s15), 31 }
   0xe   : > { %s1796_s20 = sshll.u32 %s2027_s15, 3 }
   0xf   : > { %s1802_s23 = scalar_lea.vmem %s2017_s1, %s1796_s20  ;;  %s1836_s26 = scalar_lea.vmem %s2016_s0, %s1796_s20  ;;  %1685 = vmatpush3.bf16.msra.mxu1 %v1682_v43 }
  0x10   : > { %v374_v6 = vld [vmem:[%s1802_s23] sm:$0xff]  ;;  %v375_v7 = vld [vmem:[%s1802_s23 + $0x8] sm:$0xff]  ;;  %v376_v8 = vld [vmem:[%s1802_s23 + $0x10] sm:$0xff]  ;;  %1687 = vmatprep.subr.bf16.mxu1 %v1686_v46  ;;  %s1979_s12 = scalar_lea.vmem %s2025_s9, %s1796_s20 }
  0x11   : > { %1554 = vmatprep.mubr.msk.f32.mxu0 %vm394_vm0, %v374_v6  ;;  %v377_v9 = vld [vmem:[%s1802_s23 + $0x18] sm:$0xff]  ;;  %v378_v10 = vld [vmem:[%s1802_s23 + $0x20] sm:$0xff]  ;;  %v379_v11 = vld [vmem:[%s1802_s23 + $0x28] sm:$0xff] }
  0x12   : > { %1555 = vmatmul.mubr.msk.f32.vlgmr.msra.gmra.mrb[0].mxu0 %vm394_vm0, %v375_v7  ;;  %v380_v12 = vld [vmem:[%s1802_s23 + $0x30] sm:$0xff]  ;;  %v381_v13 = vld [vmem:[%s1802_s23 + $0x38] sm:$0xff]  ;;  %v382_v14 = vld [vmem:[%s1802_s23 + $0x40] sm:$0xff] }
  0x13   : > { %1677 = vmatpush3.bf16.msra.mxu0 %v1674_v5  ;;  %1557 = vmatprep.mubr.msk.f32.mxu0 %vm394_vm0, %v376_v8  ;;  %v383_v15 = vld [vmem:[%s1802_s23 + $0x48] sm:$0xff]  ;;  %v384_v16 = vld [vmem:[%s1802_s23 + $0x50] sm:$0xff]  ;;  %v385_v17 = vld [vmem:[%s1802_s23 + $0x58] sm:$0xff] }
  0x14   : > { %v386_v18 = vld [vmem:[%s1802_s23 + $0x60] sm:$0xff]  ;;  %v387_v19 = vld [vmem:[%s1802_s23 + $0x68] sm:$0xff]  ;;  %v388_v20 = vld [vmem:[%s1802_s23 + $0x70] sm:$0xff] }
  0x15   : > { %v389_v21 = vld [vmem:[%s1802_s23 + $0x78] sm:$0xff]  ;;  %v358_v22 = vld [vmem:[%s1836_s26] sm:$0xff]  ;;  %v359_v23 = vld [vmem:[%s1836_s26 + $0x8] sm:$0xff] }
  0x16   : > { %1558 = vmatmul.mubr.msk.f32.gmra.mrb[2].mxu0 %vm394_vm0, %v377_v9  ;;  %v360_v24 = vld [vmem:[%s1836_s26 + $0x10] sm:$0xff]  ;;  %v361_v25 = vld [vmem:[%s1836_s26 + $0x18] sm:$0xff]  ;;  %v362_v26 = vld [vmem:[%s1836_s26 + $0x20] sm:$0xff] }
  0x17   : > { %1560 = vmatprep.mubr.msk.f32.mxu0 %vm394_vm0, %v378_v10  ;;  %v363_v27 = vld [vmem:[%s1836_s26 + $0x28] sm:$0xff]  ;;  %v364_v28 = vld [vmem:[%s1836_s26 + $0x30] sm:$0xff]  ;;  %v365_v29 = vld [vmem:[%s1836_s26 + $0x38] sm:$0xff] }
  0x18   : > { %v366_v30 = vld [vmem:[%s1836_s26 + $0x40] sm:$0xff]  ;;  %v367_v31 = vld [vmem:[%s1836_s26 + $0x48] sm:$0xff]  ;;  %v368_v32 = vld [vmem:[%s1836_s26 + $0x50] sm:$0xff] }
  0x19   : > { %v369_v33 = vld [vmem:[%s1836_s26 + $0x58] sm:$0xff]  ;;  %v370_v34 = vld [vmem:[%s1836_s26 + $0x60] sm:$0xff]  ;;  %v371_v35 = vld [vmem:[%s1836_s26 + $0x68] sm:$0xff] }
  0x1a   : > { %1561 = vmatmul.mubr.msk.f32.gmra.mrb[4].mxu0 %vm394_vm0, %v379_v11  ;;  %v372_v36 = vld [vmem:[%s1836_s26 + $0x70] sm:$0xff]  ;;  %v373_v37 = vld [vmem:[%s1836_s26 + $0x78] sm:$0xff] }
  0x1b   : > { %1563 = vmatprep.mubr.msk.f32.mxu0 %vm394_vm0, %v380_v12 }
  0x1e   : > { %1564 = vmatmul.mubr.msk.f32.gmra.mrb[6].mxu0 %vm394_vm0, %v381_v13 }
  0x1f   : > { %1566 = vmatprep.mubr.msk.f32.mxu0 %vm394_vm0, %v382_v14 }
  0x22   : > { %1567 = vmatmul.mubr.msk.f32.gmra.mrb[8].mxu0 %vm394_vm0, %v383_v15 }
  0x23   : > { %1569 = vmatprep.mubr.msk.f32.mxu0 %vm394_vm0, %v384_v16 }
  0x26   : > { %1570 = vmatmul.mubr.msk.f32.gmra.mrb[10].mxu0 %vm394_vm0, %v385_v17 }
  0x27   : > { %1572 = vmatprep.mubr.msk.f32.mxu0 %vm394_vm0, %v386_v18 }
  0x2a   : > { %1573 = vmatmul.mubr.msk.f32.gmra.mrb[12].mxu0 %vm394_vm0, %v387_v19 }
  0x2b   : > { %1575 = vmatprep.mubr.msk.f32.mxu0 %vm394_vm0, %v388_v20 }
  0x2e   : > { %1576 = vmatmul.mubr.msk.f32.gmra.mrb[14].mxu0 %vm394_vm0, %v389_v21 }
  0x2f   : > { %1582 = vmatprep.mubr.msk.f32.mxu0 %vm394_vm0, %v358_v22 }
  0x32   : > { %1583 = vmatmul.mubr.msk.f32.vlgmr.msra.gmra.mrb[0].mxu0 %vm394_vm0, %v359_v23 }
  0x33   : > { %1585 = vmatprep.mubr.msk.f32.mxu0 %vm394_vm0, %v360_v24 }
  0x36   : > { %1586 = vmatmul.mubr.msk.f32.gmra.mrb[2].mxu0 %vm394_vm0, %v361_v25 }
  0x37   : > { %1588 = vmatprep.mubr.msk.f32.mxu0 %vm394_vm0, %v362_v26 }
  0x3a   : > { %1589 = vmatmul.mubr.msk.f32.gmra.mrb[4].mxu0 %vm394_vm0, %v363_v27 }
  0x3b   : > { %1591 = vmatprep.mubr.msk.f32.mxu0 %vm394_vm0, %v364_v28 }
  0x3e   : > { %1592 = vmatmul.mubr.msk.f32.gmra.mrb[6].mxu0 %vm394_vm0, %v365_v29 }
  0x3f   : > { %1594 = vmatprep.mubr.msk.f32.mxu0 %vm394_vm0, %v366_v30 }
  0x42   : > { %1595 = vmatmul.mubr.msk.f32.gmra.mrb[8].mxu0 %vm394_vm0, %v367_v31 }
  0x43   : > { %1597 = vmatprep.mubr.msk.f32.mxu0 %vm394_vm0, %v368_v32 }
  0x46   : > { %1598 = vmatmul.mubr.msk.f32.gmra.mrb[10].mxu0 %vm394_vm0, %v369_v33 }
  0x47   : > { %1600 = vmatprep.mubr.msk.f32.mxu0 %vm394_vm0, %v370_v34 }
  0x4a   : > { %1601 = vmatmul.mubr.msk.f32.gmra.mrb[12].mxu0 %vm394_vm0, %v371_v35 }
  0x4b   : > { %1603 = vmatprep.mubr.msk.f32.mxu0 %vm394_vm0, %v372_v36 }
  0x4e   : > { %1604 = vmatmul.mubr.msk.f32.gmra.mrb[14].mxu0 %vm394_vm0, %v373_v37 }
 0x105   : > { %v1584_v48 = vpop.f32.mrb[0].mxu0 }
 0x106   : > { %v789_v49 = vadd.f32 %v1584_v48, %v1895_v47  ;;  %v702_v50 = vpop.f32.mrb[1].mxu0 }
 0x107   : > { %v788_v51 = vadd.f32 %v1895_v47, %v702_v50 }
 0x108   : > { %v821_v52 = vmul.f32 0.01, %v789_v49  ;;  %vm805_vm1 = vcmp.gt.f32.partialorder %v789_v49, 0.0 }
 0x109   : > { %v1587_v55 = vpop.f32.mrb[2].mxu0  ;;  %vm804_vm2 = vcmp.gt.f32.partialorder %v788_v51, 0.0  ;;  %v820_v56 = vmul.f32 0.01, %v788_v51 }
 0x10a   : > { %v791_v57 = vadd.f32 %v1587_v55, %v1895_v47  ;;  %v712_v58 = vpop.f32.mrb[3].mxu0  ;;  %v837_v63 = vsel %vm805_vm1, %v789_v49, %v821_v52 }
 0x10b   : > { %v790_v59 = vadd.f32 %v1895_v47, %v712_v58  ;;  %v836_v60 = vsel %vm804_vm2, %v788_v51, %v820_v56 }
 0x10c   : > { %v823_v62 = vmul.f32 0.01, %v791_v57  ;;  %1614 = vmatprep.mubr.msk.f32.mxu1 %vm863_vm3, %v836_v60  ;;  %vm807_vm4 = vcmp.gt.f32.partialorder %v791_v57, 0.0 }
 0x10d   : > { %vm806_vm5 = vcmp.gt.f32.partialorder %v790_v59, 0.0  ;;  %v822_v0 = vmul.f32 0.01, %v790_v59  ;;  %v1590_v1 = vpop.f32.mrb[4].mxu0  ;;  %1615 = vmatmul.mubr.msk.f32.vlgmr.msra.gmra.mrb[0].mxu1 %vm863_vm3, %v837_v63 }
 0x10e   : > { %v793_v2 = vadd.f32 %v1590_v1, %v1895_v47  ;;  %v722_v3 = vpop.f32.mrb[5].mxu0  ;;  %1689 = vmatpush3.bf16.msra.mxu1 %v1686_v46  ;;  %v839_v7 = vsel %vm807_vm4, %v791_v57, %v823_v62 }
 0x10f   : > { %v792_v4 = vadd.f32 %v1895_v47, %v722_v3  ;;  %v838_v5 = vsel %vm806_vm5, %v790_v59, %v822_v0  ;;  %1691 = vmatprep.subr.bf16.mxu1 %v1690_v61 }
 0x110   : > { %v825_v6 = vmul.f32 0.01, %v793_v2  ;;  %1617 = vmatprep.mubr.msk.f32.mxu1 %vm863_vm3, %v838_v5  ;;  %vm809_vm6 = vcmp.gt.f32.partialorder %v793_v2, 0.0 }
 0x111   : > { %vm808_vm7 = vcmp.gt.f32.partialorder %v792_v4, 0.0  ;;  %v824_v8 = vmul.f32 0.01, %v792_v4  ;;  %v1593_v9 = vpop.f32.mrb[6].mxu0  ;;  %1618 = vmatmul.mubr.msk.f32.gmra.mrb[2].mxu1 %vm863_vm3, %v839_v7 }
 0x112   : > { %v795_v10 = vadd.f32 %v1593_v9, %v1895_v47  ;;  %v732_v11 = vpop.f32.mrb[7].mxu0  ;;  %1693 = vmatpush3.bf16.msra.mxu1 %v1690_v61  ;;  %v841_v15 = vsel %vm809_vm6, %v793_v2, %v825_v6 }
 0x113   : > { %v794_v12 = vadd.f32 %v1895_v47, %v732_v11  ;;  %v840_v13 = vsel %vm808_vm7, %v792_v4, %v824_v8 }
 0x114   : > { %v827_v14 = vmul.f32 0.01, %v795_v10  ;;  %1620 = vmatprep.mubr.msk.f32.mxu1 %vm863_vm3, %v840_v13  ;;  %vm811_vm8 = vcmp.gt.f32.partialorder %v795_v10, 0.0 }
 0x115   : > { %vm810_vm9 = vcmp.gt.f32.partialorder %v794_v12, 0.0  ;;  %v826_v16 = vmul.f32 0.01, %v794_v12  ;;  %v1596_v17 = vpop.f32.mrb[8].mxu0  ;;  %1621 = vmatmul.mubr.msk.f32.gmra.mrb[4].mxu1 %vm863_vm3, %v841_v15 }
 0x116   : > { %v797_v18 = vadd.f32 %v1596_v17, %v1895_v47  ;;  %v742_v19 = vpop.f32.mrb[9].mxu0  ;;  %v843_v23 = vsel %vm811_vm8, %v795_v10, %v827_v14 }
 0x117   : > { %v796_v20 = vadd.f32 %v1895_v47, %v742_v19  ;;  %v842_v21 = vsel %vm810_vm9, %v794_v12, %v826_v16 }
 0x118   : > { %v829_v22 = vmul.f32 0.01, %v797_v18  ;;  %1623 = vmatprep.mubr.msk.f32.mxu1 %vm863_vm3, %v842_v21  ;;  %vm813_vm10 = vcmp.gt.f32.partialorder %v797_v18, 0.0 }
 0x119   : > { %vm812_vm11 = vcmp.gt.f32.partialorder %v796_v20, 0.0  ;;  %v828_v24 = vmul.f32 0.01, %v796_v20  ;;  %v1599_v25 = vpop.f32.mrb[10].mxu0  ;;  %1624 = vmatmul.mubr.msk.f32.gmra.mrb[6].mxu1 %vm863_vm3, %v843_v23 }
 0x11a   : > { %v799_v26 = vadd.f32 %v1599_v25, %v1895_v47  ;;  %v752_v27 = vpop.f32.mrb[11].mxu0  ;;  %v845_v31 = vsel %vm813_vm10, %v797_v18, %v829_v22 }
 0x11b   : > { %v798_v28 = vadd.f32 %v1895_v47, %v752_v27  ;;  %v844_v29 = vsel %vm812_vm11, %v796_v20, %v828_v24 }
 0x11c   : > { %v831_v30 = vmul.f32 0.01, %v799_v26  ;;  %1626 = vmatprep.mubr.msk.f32.mxu1 %vm863_vm3, %v844_v29  ;;  %vm815_vm12 = vcmp.gt.f32.partialorder %v799_v26, 0.0 }
 0x11d   : > { %vm814_vm13 = vcmp.gt.f32.partialorder %v798_v28, 0.0  ;;  %v830_v32 = vmul.f32 0.01, %v798_v28  ;;  %v1602_v33 = vpop.f32.mrb[12].mxu0  ;;  %1627 = vmatmul.mubr.msk.f32.gmra.mrb[8].mxu1 %vm863_vm3, %v845_v31 }
 0x11e   : > { %v801_v34 = vadd.f32 %v1602_v33, %v1895_v47  ;;  %v762_v35 = vpop.f32.mrb[13].mxu0  ;;  %v847_v39 = vsel %vm815_vm12, %v799_v26, %v831_v30 }
 0x11f   : > { %v800_v36 = vadd.f32 %v1895_v47, %v762_v35  ;;  %v846_v37 = vsel %vm814_vm13, %v798_v28, %v830_v32 }
 0x120   : > { %v833_v38 = vmul.f32 0.01, %v801_v34  ;;  %1629 = vmatprep.mubr.msk.f32.mxu1 %vm863_vm3, %v846_v37  ;;  %vm817_vm14 = vcmp.gt.f32.partialorder %v801_v34, 0.0 }
 0x121   : > { %vm816_vm15 = vcmp.gt.f32.partialorder %v800_v36, 0.0  ;;  %v832_v40 = vmul.f32 0.01, %v800_v36  ;;  %v1605_v41 = vpop.f32.mrb[14].mxu0  ;;  %1630 = vmatmul.mubr.msk.f32.gmra.mrb[10].mxu1 %vm863_vm3, %v847_v39 }
 0x122   : > { %v803_v42 = vadd.f32 %v1605_v41, %v1895_v47  ;;  %v772_v43 = vpop.f32.mrb[15].mxu0  ;;  %v849_v48 = vsel %vm817_vm14, %v801_v34, %v833_v38 }
 0x123   : > { %v802_v44 = vadd.f32 %v1895_v47, %v772_v43  ;;  %v848_v45 = vsel %vm816_vm15, %v800_v36, %v832_v40  ;;  %v1938_v47 = vld [vmem:[%s2022_s6] ss:$0 sm:$0xff] }
 0x124   : > { %v835_v46 = vmul.f32 0.01, %v803_v42  ;;  %1632 = vmatprep.mubr.msk.f32.mxu1 %vm863_vm3, %v848_v45  ;;  %vm819_vm0 = vcmp.gt.f32.partialorder %v803_v42, 0.0 }
 0x125   : > { %vm818_vm1 = vcmp.gt.f32.partialorder %v802_v44, 0.0  ;;  %v834_v49 = vmul.f32 0.01, %v802_v44  ;;  %1633 = vmatmul.mubr.msk.f32.gmra.mrb[12].mxu1 %vm863_vm3, %v849_v48 }
 0x126   : > { %v851_v51 = vsel %vm819_vm0, %v803_v42, %v835_v46 }
 0x127   : > { %v850_v50 = vsel %vm818_vm1, %v802_v44, %v834_v49 }
 0x128   : > { %1635 = vmatprep.mubr.msk.f32.mxu1 %vm863_vm3, %v850_v50 }
 0x129   : > { %1636 = vmatmul.mubr.msk.f32.gmra.mrb[14].mxu1 %vm863_vm3, %v851_v51 }
 0x1e0   : > { %v1616_v52 = vpop.f32.mrb[0].mxu1 }
 0x1e1   : > { %v984_v53 = vadd.f32 %v1616_v52, %v1938_v47  ;;  %v978_v54 = vpop.f32.mrb[1].mxu1 }
 0x1e2   : > { %v979_v55 = vadd.f32 %v1938_v47, %v978_v54 }
 0x1e3   : > { %v1074_v56 = vmul.f32 0.01, %v984_v53  ;;  %vm1058_vm2 = vcmp.gt.f32.partialorder %v984_v53, 0.0 }
 0x1e4   : > { %vm1057_vm4 = vcmp.gt.f32.partialorder %v979_v55, 0.0  ;;  %v1073_v57 = vmul.f32 0.01, %v979_v55  ;;  %v1619_v58 = vpop.f32.mrb[2].mxu1 }
 0x1e5   : > { %v994_v59 = vadd.f32 %v1619_v58, %v1938_v47  ;;  %v988_v60 = vpop.f32.mrb[3].mxu1  ;;  %v1090_v63 = vsel %vm1058_vm2, %v984_v53, %v1074_v56 }
 0x1e6   : > { %v989_v61 = vadd.f32 %v1938_v47, %v988_v60  ;;  %v1089_v62 = vsel %vm1057_vm4, %v979_v55, %v1073_v57  ;;  %vm1309_vm4 = vcmask 64512  }
 0x1e7   : > { %v1076_v0 = vmul.f32 0.01, %v994_v59  ;;  %1646 = vmatprep.mubr.msk.f32.mxu1 %vm863_vm3, %v1089_v62  ;;  %vm1060_vm5 = vcmp.gt.f32.partialorder %v994_v59, 0.0 }
 0x1e8   : > { %vm1059_vm6 = vcmp.gt.f32.partialorder %v989_v61, 0.0  ;;  %v1075_v1 = vmul.f32 0.01, %v989_v61  ;;  %v1622_v2 = vpop.f32.mrb[4].mxu1  ;;  %1647 = vmatmul.mubr.msk.f32.vlgmr.msra.gmra.mrb[16].mxu1 %vm863_vm3, %v1090_v63 }
 0x1e9   : > { %v1004_v3 = vadd.f32 %v1622_v2, %v1938_v47  ;;  %v998_v4 = vpop.f32.mrb[5].mxu1  ;;  %v1092_v8 = vsel %vm1060_vm5, %v994_v59, %v1076_v0 }
 0x1ea   : > { %v999_v5 = vadd.f32 %v1938_v47, %v998_v4  ;;  %v1091_v6 = vsel %vm1059_vm6, %v989_v61, %v1075_v1 }
 0x1eb   : > { %v1078_v7 = vmul.f32 0.01, %v1004_v3  ;;  %1649 = vmatprep.mubr.msk.f32.mxu1 %vm863_vm3, %v1091_v6  ;;  %vm1062_vm7 = vcmp.gt.f32.partialorder %v1004_v3, 0.0 }
 0x1ec   : > { %vm1061_vm8 = vcmp.gt.f32.partialorder %v999_v5, 0.0  ;;  %v1077_v9 = vmul.f32 0.01, %v999_v5  ;;  %v1625_v10 = vpop.f32.mrb[6].mxu1  ;;  %1650 = vmatmul.mubr.msk.f32.gmra.mrb[18].mxu1 %vm863_vm3, %v1092_v8 }
 0x1ed   : > { %v1014_v11 = vadd.f32 %v1625_v10, %v1938_v47  ;;  %v1008_v12 = vpop.f32.mrb[7].mxu1  ;;  %v1094_v16 = vsel %vm1062_vm7, %v1004_v3, %v1078_v7 }
 0x1ee   : > { %v1009_v13 = vadd.f32 %v1938_v47, %v1008_v12  ;;  %v1093_v14 = vsel %vm1061_vm8, %v999_v5, %v1077_v9 }
 0x1ef   : > { %v1080_v15 = vmul.f32 0.01, %v1014_v11  ;;  %1652 = vmatprep.mubr.msk.f32.mxu1 %vm863_vm3, %v1093_v14  ;;  %vm1064_vm9 = vcmp.gt.f32.partialorder %v1014_v11, 0.0 }
 0x1f0   : > { %vm1063_vm10 = vcmp.gt.f32.partialorder %v1009_v13, 0.0  ;;  %v1079_v17 = vmul.f32 0.01, %v1009_v13  ;;  %v1628_v18 = vpop.f32.mrb[8].mxu1  ;;  %1653 = vmatmul.mubr.msk.f32.gmra.mrb[20].mxu1 %vm863_vm3, %v1094_v16 }
 0x1f1   : > { %v1024_v19 = vadd.f32 %v1628_v18, %v1938_v47  ;;  %v1018_v20 = vpop.f32.mrb[9].mxu1  ;;  %v1096_v24 = vsel %vm1064_vm9, %v1014_v11, %v1080_v15 }
 0x1f2   : > { %v1019_v21 = vadd.f32 %v1938_v47, %v1018_v20  ;;  %v1095_v22 = vsel %vm1063_vm10, %v1009_v13, %v1079_v17 }
 0x1f3   : > { %v1082_v23 = vmul.f32 0.01, %v1024_v19  ;;  %1655 = vmatprep.mubr.msk.f32.mxu1 %vm863_vm3, %v1095_v22  ;;  %vm1066_vm11 = vcmp.gt.f32.partialorder %v1024_v19, 0.0 }
 0x1f4   : > { %vm1065_vm12 = vcmp.gt.f32.partialorder %v1019_v21, 0.0  ;;  %v1081_v25 = vmul.f32 0.01, %v1019_v21  ;;  %v1631_v26 = vpop.f32.mrb[10].mxu1  ;;  %1656 = vmatmul.mubr.msk.f32.gmra.mrb[22].mxu1 %vm863_vm3, %v1096_v24 }
 0x1f5   : > { %v1034_v27 = vadd.f32 %v1631_v26, %v1938_v47  ;;  %v1028_v28 = vpop.f32.mrb[11].mxu1  ;;  %v1098_v32 = vsel %vm1066_vm11, %v1024_v19, %v1082_v23 }
 0x1f6   : > { %v1029_v29 = vadd.f32 %v1938_v47, %v1028_v28  ;;  %v1097_v30 = vsel %vm1065_vm12, %v1019_v21, %v1081_v25 }
 0x1f7   : > { %v1084_v31 = vmul.f32 0.01, %v1034_v27  ;;  %1658 = vmatprep.mubr.msk.f32.mxu1 %vm863_vm3, %v1097_v30  ;;  %vm1068_vm13 = vcmp.gt.f32.partialorder %v1034_v27, 0.0 }
 0x1f8   : > { %vm1067_vm14 = vcmp.gt.f32.partialorder %v1029_v29, 0.0  ;;  %v1083_v33 = vmul.f32 0.01, %v1029_v29  ;;  %v1634_v34 = vpop.f32.mrb[12].mxu1  ;;  %1659 = vmatmul.mubr.msk.f32.gmra.mrb[24].mxu1 %vm863_vm3, %v1098_v32 }
 0x1f9   : > { %v1044_v35 = vadd.f32 %v1634_v34, %v1938_v47  ;;  %v1038_v36 = vpop.f32.mrb[13].mxu1  ;;  %v1100_v40 = vsel %vm1068_vm13, %v1034_v27, %v1084_v31 }
 0x1fa   : > { %v1039_v37 = vadd.f32 %v1938_v47, %v1038_v36  ;;  %v1099_v38 = vsel %vm1067_vm14, %v1029_v29, %v1083_v33 }
 0x1fb   : > { %v1086_v39 = vmul.f32 0.01, %v1044_v35  ;;  %1661 = vmatprep.mubr.msk.f32.mxu1 %vm863_vm3, %v1099_v38  ;;  %vm1070_vm15 = vcmp.gt.f32.partialorder %v1044_v35, 0.0 }
 0x1fc   : > { %vm1069_vm0 = vcmp.gt.f32.partialorder %v1039_v37, 0.0  ;;  %v1085_v41 = vmul.f32 0.01, %v1039_v37  ;;  %v1637_v42 = vpop.f32.mrb[14].mxu1  ;;  %1662 = vmatmul.mubr.msk.f32.gmra.mrb[26].mxu1 %vm863_vm3, %v1100_v40 }
 0x1fd   : > { %v1054_v43 = vadd.f32 %v1637_v42, %v1938_v47  ;;  %v1048_v44 = vpop.f32.mrb[15].mxu1  ;;  %v1102_v49 = vsel %vm1070_vm15, %v1044_v35, %v1086_v39 }
 0x1fe   : > { %v1049_v45 = vadd.f32 %v1938_v47, %v1048_v44  ;;  %v1101_v46 = vsel %vm1069_vm0, %v1039_v37, %v1085_v41  ;;  %v1455_v47 = vld [vmem:[%s2024_s8] ss:$0 sm:$0xff] }
 0x1ff   : > { %v1088_v48 = vmul.f32 0.01, %v1054_v43  ;;  %1664 = vmatprep.mubr.msk.f32.mxu1 %vm863_vm3, %v1101_v46  ;;  %vm1072_vm1 = vcmp.gt.f32.partialorder %v1054_v43, 0.0 }
 0x200   : > { %vm1071_vm2 = vcmp.gt.f32.partialorder %v1049_v45, 0.0  ;;  %v1087_v50 = vmul.f32 0.01, %v1049_v45  ;;  %1665 = vmatmul.mubr.msk.f32.gmra.mrb[28].mxu1 %vm863_vm3, %v1102_v49 }
 0x201   : > { %v1104_v52 = vsel %vm1072_vm1, %v1054_v43, %v1088_v48 }
 0x202   : > { %v1103_v51 = vsel %vm1071_vm2, %v1049_v45, %v1087_v50 }
 0x203   : > { %1667 = vmatprep.mubr.msk.f32.mxu1 %vm863_vm3, %v1103_v51 }
 0x204   : > { %1668 = vmatmul.mubr.msk.f32.gmra.mrb[30].mxu1 %vm863_vm3, %v1104_v52 }
 0x2bb   : > { %v1648_v53 = vpop.f32.mrb[16].mxu1 }
 0x2bc   : > { %v1236_v54 = vadd.f32 %v1648_v53, %v1455_v47  ;;  %v1230_v55 = vpop.f32.mrb[17].mxu1 }
 0x2bd   : > { %v1231_v56 = vadd.f32 %v1455_v47, %v1230_v55 }
 0x2be   : > { %1311 = vst.msk [vmem:[%s1979_s12 + $0x8] sm:$0xff] %vm1309_vm4, %v1236_v54 }
 0x2bf   : > { %1310 = vst.msk [vmem:[%s1979_s12] sm:$0xff] %vm1309_vm4, %v1231_v56  ;;  %v1651_v57 = vpop.f32.mrb[18].mxu1 }
 0x2c0   : > { %v1246_v58 = vadd.f32 %v1651_v57, %v1455_v47  ;;  %v1240_v59 = vpop.f32.mrb[19].mxu1 }
 0x2c1   : > { %v1241_v60 = vadd.f32 %v1455_v47, %v1240_v59 }
 0x2c2   : > { %1313 = vst.msk [vmem:[%s1979_s12 + $0x18] sm:$0xff] %vm1309_vm4, %v1246_v58 }
 0x2c3   : > { %1312 = vst.msk [vmem:[%s1979_s12 + $0x10] sm:$0xff] %vm1309_vm4, %v1241_v60  ;;  %v1654_v61 = vpop.f32.mrb[20].mxu1 }
 0x2c4   : > { %v1256_v62 = vadd.f32 %v1654_v61, %v1455_v47  ;;  %v1250_v63 = vpop.f32.mrb[21].mxu1 }
 0x2c5   : > { %v1251_v0 = vadd.f32 %v1455_v47, %v1250_v63 }
 0x2c6   : > { %1315 = vst.msk [vmem:[%s1979_s12 + $0x28] sm:$0xff] %vm1309_vm4, %v1256_v62 }
 0x2c7   : > { %1314 = vst.msk [vmem:[%s1979_s12 + $0x20] sm:$0xff] %vm1309_vm4, %v1251_v0  ;;  %v1657_v1 = vpop.f32.mrb[22].mxu1 }
 0x2c8   : > { %v1266_v2 = vadd.f32 %v1657_v1, %v1455_v47  ;;  %v1260_v3 = vpop.f32.mrb[23].mxu1 }
 0x2c9   : > { %v1261_v4 = vadd.f32 %v1455_v47, %v1260_v3 }
 0x2ca   : > { %1317 = vst.msk [vmem:[%s1979_s12 + $0x38] sm:$0xff] %vm1309_vm4, %v1266_v2 }
 0x2cb   : > { %1316 = vst.msk [vmem:[%s1979_s12 + $0x30] sm:$0xff] %vm1309_vm4, %v1261_v4  ;;  %v1660_v5 = vpop.f32.mrb[24].mxu1 }
 0x2cc   : > { %v1276_v6 = vadd.f32 %v1660_v5, %v1455_v47  ;;  %v1270_v7 = vpop.f32.mrb[25].mxu1 }
 0x2cd   : > { %v1271_v8 = vadd.f32 %v1455_v47, %v1270_v7 }
 0x2ce   : > { %1319 = vst.msk [vmem:[%s1979_s12 + $0x48] sm:$0xff] %vm1309_vm4, %v1276_v6 }
 0x2cf   : > { %1318 = vst.msk [vmem:[%s1979_s12 + $0x40] sm:$0xff] %vm1309_vm4, %v1271_v8  ;;  %v1663_v9 = vpop.f32.mrb[26].mxu1 }
 0x2d0   : > { %v1286_v10 = vadd.f32 %v1663_v9, %v1455_v47  ;;  %v1280_v11 = vpop.f32.mrb[27].mxu1 }
 0x2d1   : > { %v1281_v12 = vadd.f32 %v1455_v47, %v1280_v11 }
 0x2d2   : > { %1321 = vst.msk [vmem:[%s1979_s12 + $0x58] sm:$0xff] %vm1309_vm4, %v1286_v10 }
 0x2d3   : > { %1320 = vst.msk [vmem:[%s1979_s12 + $0x50] sm:$0xff] %vm1309_vm4, %v1281_v12  ;;  %v1666_v13 = vpop.f32.mrb[28].mxu1 }
 0x2d4   : > { %v1296_v14 = vadd.f32 %v1666_v13, %v1455_v47  ;;  %v1290_v15 = vpop.f32.mrb[29].mxu1 }
 0x2d5   : > { %v1291_v16 = vadd.f32 %v1455_v47, %v1290_v15 }
 0x2d6   : > { %1323 = vst.msk [vmem:[%s1979_s12 + $0x68] sm:$0xff] %vm1309_vm4, %v1296_v14 }
 0x2d7   : > { %1322 = vst.msk [vmem:[%s1979_s12 + $0x60] sm:$0xff] %vm1309_vm4, %v1291_v16  ;;  %v1669_v17 = vpop.f32.mrb[30].mxu1 }
 0x2d8   : > { %v1306_v18 = vadd.f32 %v1669_v17, %v1455_v47  ;;  %v1300_v19 = vpop.f32.mrb[31].mxu1 }
 0x2d9   : > { %v1301_v20 = vadd.f32 %v1455_v47, %v1300_v19 }
 0x2da   : > { %1325 = vst.msk [vmem:[%s1979_s12 + $0x78] sm:$0xff] %vm1309_vm4, %v1306_v18 }
 0x2db   : > { %1324 = vst.msk [vmem:[%s1979_s12 + $0x70] sm:$0xff] %vm1309_vm4, %v1301_v20 }
 0x2dc PF: > { %s19_s30 = sadd.s32 1, %s1724_s30  }
 0x2dd   : > { %p16_p4 = scmp.ge.s32.totalorder %s19_s30, 4  }
 0x2df   :  { %18 = sbr.rel (!%p16_p4) target bundleno = 1 (0x1), region = 89 }

</bundles_post_ra>
